<compile_context>
chip_gen: v7x
topology: tpu7x:2x2x1
jax: 0.10.0
libtpu: 0.0.40
codegen_flags: <defaults>
</compile_context>

<pallas_src>
import jax
import jax.numpy as jnp
from jax.experimental import pallas as pl
from jax.experimental.pallas import tpu as pltpu

MAX_SCALE = 2.0


def _gelu_exact(x):
    # nn.GELU() default: x * 0.5 * (1 + erf(x / sqrt(2)))
    return 0.5 * x * (1.0 + jax.lax.erf(x * jnp.float32(0.7071067811865476)))


def _round_up(n, m):
    return ((n + m - 1) // m) * m


def _choose_block_b(B):
    """Batch-tile heuristic.

    Large batches: 512-row tiles (multiple of 128 and 256 -> clean MXU M
    tiles on every generation) so the ~0.35us per-grid-step overhead is well
    amortized.  Small/medium batches: split into (at least) two tiles so the
    v7x megacore gets both TensorCores busy via dimension_semantics.
    """
    if B >= 1024:
        return 512
    if B > 8:
        return _round_up((B + 1) // 2, 8)
    return 8


def embnet_kernel(x_ref, w1_ref, w2_ref, w3_ref, aff_ref, o_ref):
    hid_p = w1_ref.shape[1]
    dout_p = w3_ref.shape[1]

    # x streamed in its caller dtype (f32 or bf16); cast to bf16 MXU operand.
    x = x_ref[...].astype(jnp.bfloat16)                 # (block_b, d_in)

    # packed per-feature params (f32), rows: b1,s1,t1,b2,s2,t2,b3,[scale,...]
    b1 = aff_ref[0:1, :hid_p]
    s1 = aff_ref[1:2, :hid_p]
    t1 = aff_ref[2:3, :hid_p]
    b2 = aff_ref[3:4, :hid_p]
    s2 = aff_ref[4:5, :hid_p]
    t2 = aff_ref[5:6, :hid_p]
    b3 = aff_ref[6:7, :dout_p]
    scale = aff_ref[7:8, 0:1]                           # (1,1) precomputed scale

    # --- layer 0: Linear -> GELU -> BatchNorm1d (folded affine), f32 math ---
    h = jnp.dot(x, w1_ref[...], preferred_element_type=jnp.float32) + b1
    h = _gelu_exact(h)
    h = h * s1 + t1

    # --- ResidualBlock: h + BN(GELU(Linear(h))) ---
    r = jnp.dot(h.astype(jnp.bfloat16), w2_ref[...],
                preferred_element_type=jnp.float32) + b2
    r = _gelu_exact(r)
    r = r * s2 + t2
    h = h + r

    # --- Dropout (identity in eval) -> final Linear ---
    z = jnp.dot(h.astype(jnp.bfloat16), w3_ref[...],
                preferred_element_type=jnp.float32) + b3

    # --- F.normalize(p=2, dim=-1) with eps=1e-12 on the norm, fused with the
    #     learned scale: clamp sumsq at 1e-24 == clamp norm at 1e-12 ---
    sumsq = jnp.sum(z * z, axis=-1, keepdims=True)
    inv = jax.lax.rsqrt(jnp.maximum(sumsq, jnp.float32(1e-24)))
    o_ref[...] = (z * (inv * scale)).astype(o_ref.dtype)


def prepare_params(params):
    """One-time parameter prep (hoisted out of the per-call path).

    Pads the output/feature dims of W1/W2/W3 to lane multiples (128), casts
    them to bf16 MXU operands, evaluates sigmoid(alpha) once, and packs
    b1/s1/t1/b2/s2/t2/b3/scale into a single (8, pmax) f32 slab (one DMA).
    Call this once per parameter update, not per forward call.
    """
    d_in, hidden = params["w1"].shape
    d_out = params["w3"].shape[1]
    hid_p = _round_up(hidden, 128)
    d_out_p = _round_up(d_out, 128)
    pmax = max(hid_p, d_out_p)

    w1 = jnp.zeros((d_in, hid_p), jnp.float32).at[:, :hidden].set(
        params["w1"]).astype(jnp.bfloat16)
    w2 = jnp.zeros((hid_p, hid_p), jnp.float32).at[:hidden, :hidden].set(
        params["w2"]).astype(jnp.bfloat16)
    w3 = jnp.zeros((hid_p, d_out_p), jnp.float32).at[:hidden, :d_out].set(
        params["w3"]).astype(jnp.bfloat16)

    scale = 1.0 + (MAX_SCALE - 1.0) * jax.nn.sigmoid(params["alpha"][0, 0])
    aff = jnp.zeros((8, pmax), jnp.float32)
    aff = aff.at[0, :hidden].set(params["b1"][0])
    aff = aff.at[1, :hidden].set(params["s1"][0])
    aff = aff.at[2, :hidden].set(params["t1"][0])
    aff = aff.at[3, :hidden].set(params["b2"][0])
    aff = aff.at[4, :hidden].set(params["s2"][0])
    aff = aff.at[5, :hidden].set(params["t2"][0])
    aff = aff.at[6, :d_out].set(params["b3"][0])
    aff = aff.at[7, 0].set(scale)

    return dict(w1=w1, w2=w2, w3=w3, aff=aff,
                d_in=d_in, hidden=hidden, d_out=d_out,
                hid_p=hid_p, d_out_p=d_out_p)


def embnet_forward(x, prep, *, block_b=None, out_dtype=jnp.float32):
    """x: (B, input_dim), f32 (or bf16 to halve the input stream).
    prep: output of prepare_params().  Returns (B, output_dim) in out_dtype."""
    B, d_in = x.shape
    assert d_in == prep["d_in"], "input feature dim mismatch with prepared params"
    hid_p, d_out_p, d_out = prep["hid_p"], prep["d_out_p"], prep["d_out"]
    w1, w2, w3, aff = prep["w1"], prep["w2"], prep["w3"], prep["aff"]
    pmax = aff.shape[1]

    if block_b is None:
        block_b = _choose_block_b(B)
    block_b = max(8, _round_up(block_b, 8))
    grid = (pl.cdiv(B, block_b),)          # ragged edge block is clamped by Pallas

    x_bytes = jnp.dtype(x.dtype).itemsize
    out_bytes = jnp.dtype(out_dtype).itemsize

    flops = 2 * B * (d_in * hid_p + hid_p * hid_p + hid_p * d_out_p)
    bytes_accessed = (B * d_in * x_bytes                  # streamed x
                      + (w1.size + w2.size + w3.size) * 2  # resident bf16 weights
                      + aff.size * 4
                      + B * d_out_p * out_bytes)           # lane-dense output
    cost = pl.CostEstimate(flops=flops,
                           transcendentals=2 * B * hid_p,  # two GELU layers
                           bytes_accessed=bytes_accessed)

    # Scoped-VMEM budget: double-buffered x/out tiles + (pipeliner-)buffered
    # resident bf16 weights + headroom for the f32 h/r/z intermediates.
    # Floor of 32 MiB covers v5e's 16 MiB scoped default when block_b grows.
    vmem_est = (2 * block_b * d_in * x_bytes
                + 2 * block_b * d_out_p * out_bytes
                + 2 * 2 * (w1.size + w2.size + w3.size)
                + 2 * 4 * aff.size
                + 6 * block_b * hid_p * 4)
    vmem_limit = int(min(100 * 1024 * 1024, max(32 * 1024 * 1024, 2 * vmem_est)))

    out_p = pl.pallas_call(
        embnet_kernel,
        out_shape=jax.ShapeDtypeStruct((B, d_out_p), out_dtype),
        grid_spec=pltpu.PrefetchScalarGridSpec(
            num_scalar_prefetch=0,
            grid=grid,
            in_specs=[
                pl.BlockSpec((block_b, d_in), lambda i: (i, 0)),    # x tile (streamed)
                pl.BlockSpec((d_in, hid_p), lambda i: (0, 0)),      # w1 (resident)
                pl.BlockSpec((hid_p, hid_p), lambda i: (0, 0)),     # w2 (resident)
                pl.BlockSpec((hid_p, d_out_p), lambda i: (0, 0)),   # w3 (resident)
                pl.BlockSpec((8, pmax), lambda i: (0, 0)),          # packed affine/scale
            ],
            out_specs=pl.BlockSpec((block_b, d_out_p), lambda i: (i, 0)),
        ),
        compiler_params=pltpu.CompilerParams(
            dimension_semantics=("parallel",),
            vmem_limit_bytes=vmem_limit),
        cost_estimate=cost,
    )(x, w1, w2, w3, aff)

    return out_p[:, :d_out]


def make_params(key, d_in, hidden, d_out):
    """Deterministic synthetic parameters. BatchNorm (eval) folded to affine:
    y = z * s + t,  s = gamma/sqrt(var+eps),  t = beta - mean*s."""
    ks = jax.random.split(key, 12)
    eps = 1e-5

    def fold_bn(gamma, beta, mean, var):
        s = gamma / jnp.sqrt(var + eps)
        t = beta - mean * s
        return s[None, :], t[None, :]

    w1 = jax.random.normal(ks[0], (d_in, hidden), jnp.float32) * 0.05
    b1 = jax.random.normal(ks[1], (1, hidden), jnp.float32) * 0.05
    g1 = 1.0 + 0.1 * jax.random.normal(ks[2], (hidden,), jnp.float32)
    be1 = 0.1 * jax.random.normal(ks[3], (hidden,), jnp.float32)
    m1 = 0.1 * jax.random.normal(ks[4], (hidden,), jnp.float32)
    v1 = jnp.abs(1.0 + 0.1 * jax.random.normal(ks[5], (hidden,), jnp.float32))
    s1, t1 = fold_bn(g1, be1, m1, v1)

    w2 = jax.random.normal(ks[6], (hidden, hidden), jnp.float32) * 0.05
    b2 = jax.random.normal(ks[7], (1, hidden), jnp.float32) * 0.05
    g2 = 1.0 + 0.1 * jax.random.normal(ks[8], (hidden,), jnp.float32)
    be2 = 0.1 * jax.random.normal(ks[9], (hidden,), jnp.float32)
    m2 = jnp.zeros((hidden,), jnp.float32)
    v2 = jnp.ones((hidden,), jnp.float32)
    s2, t2 = fold_bn(g2, be2, m2, v2)

    w3 = jax.random.normal(ks[10], (hidden, d_out), jnp.float32) * 0.05
    b3 = jax.random.normal(ks[11], (1, d_out), jnp.float32) * 0.05

    alpha = jnp.zeros((1, 1), jnp.float32)   # nn.Parameter(torch.zeros(1))

    return dict(w1=w1, b1=b1, s1=s1, t1=t1,
                w2=w2, b2=b2, s2=s2, t2=t2,
                w3=w3, b3=b3, alpha=alpha)


def embnet_reference_f32(x, p):
    """Pure f32 reference (matches the PyTorch module in eval mode)."""
    h = x @ p["w1"] + p["b1"]
    h = _gelu_exact(h)
    h = h * p["s1"] + p["t1"]
    r = h @ p["w2"] + p["b2"]
    r = _gelu_exact(r)
    r = r * p["s2"] + p["t2"]
    h = h + r
    z = h @ p["w3"] + p["b3"]
    emb = z / jnp.maximum(jnp.linalg.norm(z, axis=-1, keepdims=True), 1e-12)
    scale = 1.0 + (MAX_SCALE - 1.0) * jax.nn.sigmoid(p["alpha"])
    return emb * scale


def embnet_reference_bf16(x, p):
    """Reference with the same bf16-operand / f32-accumulate matmuls as the kernel."""
    bf = lambda a: a.astype(jnp.bfloat16)
    h = jnp.dot(bf(x), bf(p["w1"]), preferred_element_type=jnp.float32) + p["b1"]
    h = _gelu_exact(h)
    h = h * p["s1"] + p["t1"]
    r = jnp.dot(bf(h), bf(p["w2"]), preferred_element_type=jnp.float32) + p["b2"]
    r = _gelu_exact(r)
    r = r * p["s2"] + p["t2"]
    h = h + r
    z = jnp.dot(bf(h), bf(p["w3"]), preferred_element_type=jnp.float32) + p["b3"]
    inv = jax.lax.rsqrt(jnp.maximum(jnp.sum(z * z, axis=-1, keepdims=True), 1e-24))
    scale = 1.0 + (MAX_SCALE - 1.0) * jax.nn.sigmoid(p["alpha"])
    return z * inv * scale


if __name__ == "__main__":
    # Small shapes consistent with the module (scaled down from 784/256/300),
    # deliberately non-multiples of 128 to exercise the feature padding, with
    # a small enough batch that the auto tile picker produces grid=2
    # (pipelined / megacore-shardable path).
    B, D_IN, HIDDEN, D_OUT = 16, 48, 32, 20

    key = jax.random.PRNGKey(0)
    kx, kp = jax.random.split(key)
    x = jax.random.normal(kx, (B, D_IN), jnp.float32)
    params = make_params(kp, D_IN, HIDDEN, D_OUT)

    prep = prepare_params(params)       # one-time: pad+cast weights, pack affine
    out = embnet_forward(x, prep)       # auto block_b=8 -> grid=2
    out = jax.block_until_ready(out)
    assert out.shape == (B, D_OUT)
    assert bool(jnp.all(jnp.isfinite(out)))

    # Tight check vs a reference using the same bf16-operand matmuls.
    ref_bf16 = embnet_reference_bf16(x, params)
    assert jnp.allclose(out, ref_bf16, atol=1e-3, rtol=1e-3), \
        "mismatch vs bf16-operand JAX reference"

    # Sanity check vs the full-f32 module semantics (bf16 rounding tolerance).
    ref_f32 = embnet_reference_f32(x, params)
    assert jnp.allclose(out, ref_f32, atol=5e-2, rtol=5e-2), \
        "mismatch vs f32 JAX reference"

    # Ragged batch (B not a multiple of block_b) exercises the clamped edge
    # block of the new cdiv-based grid (no wrapper-side batch padding).
    out_r = jax.block_until_ready(embnet_forward(x[:13], prep, block_b=8))
    assert out_r.shape == (13, D_OUT)
    assert jnp.allclose(out_r, ref_bf16[:13], atol=1e-3, rtol=1e-3), \
        "mismatch on ragged-batch path"

    print("KERNEL_OK")
</pallas_src>

<mosaic_0001>
module attributes {stable_mosaic.version = 11 : i64} {
  func.func @embnet_kernel(%arg0: i32, %arg1: memref<8x48xf32, #tpu.memory_space<vmem>>, %arg2: memref<48x128xbf16, #tpu.memory_space<vmem>>, %arg3: memref<128x128xbf16, #tpu.memory_space<vmem>>, %arg4: memref<128x128xbf16, #tpu.memory_space<vmem>>, %arg5: memref<8x128xf32, #tpu.memory_space<vmem>>, %arg6: memref<8x128xf32, #tpu.memory_space<vmem>>) attributes {dimension_semantics = [#tpu.dimension_semantics<parallel>], iteration_bounds = array<i64: 2>, scalar_prefetch = 0 : i64, scratch_operands = 0 : i64, tpu.core_type = #tpu.core_type<tc>, window_params = [{transform_indices = @transform_0, window_bounds = array<i64: 8, 48>}, {pipeline_mode = #tpu.pipeline_mode<synchronous>, transform_indices = @transform_1, window_bounds = array<i64: 48, 128>}, {pipeline_mode = #tpu.pipeline_mode<synchronous>, transform_indices = @transform_2, window_bounds = array<i64: 128, 128>}, {pipeline_mode = #tpu.pipeline_mode<synchronous>, transform_indices = @transform_3, window_bounds = array<i64: 128, 128>}, {pipeline_mode = #tpu.pipeline_mode<synchronous>, transform_indices = @transform_4, window_bounds = array<i64: 8, 128>}, {transform_indices = @transform_5, window_bounds = array<i64: 8, 128>}]} {
    %c0 = arith.constant 0 : index
    %c0_0 = arith.constant 0 : index
    %0 = vector.load %arg1[%c0, %c0_0] : memref<8x48xf32, #tpu.memory_space<vmem>>, vector<8x48xf32>
    %1 = arith.truncf %0 : vector<8x48xf32> to vector<8x48xbf16>
    %c0_1 = arith.constant 0 : index
    %c0_2 = arith.constant 0 : index
    %2 = vector.load %arg5[%c0_1, %c0_2] : memref<8x128xf32, #tpu.memory_space<vmem>>, vector<1x128xf32>
    %c1 = arith.constant 1 : index
    %c0_3 = arith.constant 0 : index
    %3 = vector.load %arg5[%c1, %c0_3] : memref<8x128xf32, #tpu.memory_space<vmem>>, vector<1x128xf32>
    %c2 = arith.constant 2 : index
    %c0_4 = arith.constant 0 : index
    %4 = vector.load %arg5[%c2, %c0_4] : memref<8x128xf32, #tpu.memory_space<vmem>>, vector<1x128xf32>
    %c3 = arith.constant 3 : index
    %c0_5 = arith.constant 0 : index
    %5 = vector.load %arg5[%c3, %c0_5] : memref<8x128xf32, #tpu.memory_space<vmem>>, vector<1x128xf32>
    %c4 = arith.constant 4 : index
    %c0_6 = arith.constant 0 : index
    %6 = vector.load %arg5[%c4, %c0_6] : memref<8x128xf32, #tpu.memory_space<vmem>>, vector<1x128xf32>
    %c5 = arith.constant 5 : index
    %c0_7 = arith.constant 0 : index
    %7 = vector.load %arg5[%c5, %c0_7] : memref<8x128xf32, #tpu.memory_space<vmem>>, vector<1x128xf32>
    %c6 = arith.constant 6 : index
    %c0_8 = arith.constant 0 : index
    %8 = vector.load %arg5[%c6, %c0_8] : memref<8x128xf32, #tpu.memory_space<vmem>>, vector<1x128xf32>
    %c7 = arith.constant 7 : index
    %c0_9 = arith.constant 0 : index
    %9 = vector.load %arg5[%c7, %c0_9] : memref<8x128xf32, #tpu.memory_space<vmem>>, vector<1x1xf32>
    %c0_10 = arith.constant 0 : index
    %c0_11 = arith.constant 0 : index
    %10 = vector.load %arg2[%c0_10, %c0_11] : memref<48x128xbf16, #tpu.memory_space<vmem>>, vector<48x128xbf16>
    %cst = arith.constant dense<0.000000e+00> : vector<8x128xf32>
    %11 = tpu.matmul %1, %10, %cst {dimension_numbers = #tpu.dot_dimension_numbers<[1], [0], [0], [1], [0, 0, 1, 1], [], []>} : vector<8x48xbf16>, vector<48x128xbf16>, vector<8x128xf32> -> vector<8x128xf32>
    %12 = vector.broadcast %2 : vector<1x128xf32> to vector<8x128xf32>
    %13 = arith.addf %11, %12 : vector<8x128xf32>
    %cst_12 = arith.constant 5.000000e-01 : f32
    %14 = vector.broadcast %cst_12 : f32 to vector<8x128xf32>
    %15 = arith.mulf %14, %13 : vector<8x128xf32>
    %cst_13 = arith.constant 0.707106769 : f32
    %16 = vector.broadcast %cst_13 : f32 to vector<8x128xf32>
    %17 = arith.mulf %13, %16 : vector<8x128xf32>
    %18 = math.erf %17 : vector<8x128xf32>
    %cst_14 = arith.constant 1.000000e+00 : f32
    %19 = vector.broadcast %cst_14 : f32 to vector<8x128xf32>
    %20 = arith.addf %19, %18 : vector<8x128xf32>
    %21 = arith.mulf %15, %20 : vector<8x128xf32>
    %22 = vector.broadcast %3 : vector<1x128xf32> to vector<8x128xf32>
    %23 = arith.mulf %21, %22 : vector<8x128xf32>
    %24 = vector.broadcast %4 : vector<1x128xf32> to vector<8x128xf32>
    %25 = arith.addf %23, %24 : vector<8x128xf32>
    %26 = arith.truncf %25 : vector<8x128xf32> to vector<8x128xbf16>
    %c0_15 = arith.constant 0 : index
    %c0_16 = arith.constant 0 : index
    %27 = vector.load %arg3[%c0_15, %c0_16] : memref<128x128xbf16, #tpu.memory_space<vmem>>, vector<128x128xbf16>
    %cst_17 = arith.constant dense<0.000000e+00> : vector<8x128xf32>
    %28 = tpu.matmul %26, %27, %cst_17 {dimension_numbers = #tpu.dot_dimension_numbers<[1], [0], [0], [1], [0, 0, 1, 1], [], []>} : vector<8x128xbf16>, vector<128x128xbf16>, vector<8x128xf32> -> vector<8x128xf32>
    %29 = vector.broadcast %5 : vector<1x128xf32> to vector<8x128xf32>
    %30 = arith.addf %28, %29 : vector<8x128xf32>
    %cst_18 = arith.constant 5.000000e-01 : f32
    %31 = vector.broadcast %cst_18 : f32 to vector<8x128xf32>
    %32 = arith.mulf %31, %30 : vector<8x128xf32>
    %cst_19 = arith.constant 0.707106769 : f32
    %33 = vector.broadcast %cst_19 : f32 to vector<8x128xf32>
    %34 = arith.mulf %30, %33 : vector<8x128xf32>
    %35 = math.erf %34 : vector<8x128xf32>
    %cst_20 = arith.constant 1.000000e+00 : f32
    %36 = vector.broadcast %cst_20 : f32 to vector<8x128xf32>
    %37 = arith.addf %36, %35 : vector<8x128xf32>
    %38 = arith.mulf %32, %37 : vector<8x128xf32>
    %39 = vector.broadcast %6 : vector<1x128xf32> to vector<8x128xf32>
    %40 = arith.mulf %38, %39 : vector<8x128xf32>
    %41 = vector.broadcast %7 : vector<1x128xf32> to vector<8x128xf32>
    %42 = arith.addf %40, %41 : vector<8x128xf32>
    %43 = arith.addf %25, %42 : vector<8x128xf32>
    %44 = arith.truncf %43 : vector<8x128xf32> to vector<8x128xbf16>
    %c0_21 = arith.constant 0 : index
    %c0_22 = arith.constant 0 : index
    %45 = vector.load %arg4[%c0_21, %c0_22] : memref<128x128xbf16, #tpu.memory_space<vmem>>, vector<128x128xbf16>
    %cst_23 = arith.constant dense<0.000000e+00> : vector<8x128xf32>
    %46 = tpu.matmul %44, %45, %cst_23 {dimension_numbers = #tpu.dot_dimension_numbers<[1], [0], [0], [1], [0, 0, 1, 1], [], []>} : vector<8x128xbf16>, vector<128x128xbf16>, vector<8x128xf32> -> vector<8x128xf32>
    %47 = vector.broadcast %8 : vector<1x128xf32> to vector<8x128xf32>
    %48 = arith.addf %46, %47 : vector<8x128xf32>
    %49 = arith.mulf %48, %48 : vector<8x128xf32>
    %cst_24 = arith.constant dense<0.000000e+00> : vector<8xf32>
    %50 = vector.multi_reduction <add>, %49, %cst_24 [1] : vector<8x128xf32> to vector<8xf32>
    %51 = vector.shape_cast %50 : vector<8xf32> to vector<8x1xf32>
    %cst_25 = arith.constant 1.000000e-24 : f32
    %52 = vector.broadcast %cst_25 : f32 to vector<8x1xf32>
    %53 = arith.maximumf %51, %52 : vector<8x1xf32>
    %54 = math.rsqrt %53 : vector<8x1xf32>
    %55 = vector.broadcast %9 : vector<1x1xf32> to vector<8x1xf32>
    %56 = arith.mulf %54, %55 : vector<8x1xf32>
    %57 = vector.broadcast %56 : vector<8x1xf32> to vector<8x128xf32>
    %58 = arith.mulf %48, %57 : vector<8x128xf32>
    %c0_26 = arith.constant 0 : index
    %c0_27 = arith.constant 0 : index
    %59 = vector.load %arg6[%c0_26, %c0_27] : memref<8x128xf32, #tpu.memory_space<vmem>>, vector<8x128xf32>
    tpu.vector_store %arg6[%c0_26, %c0_27], %58 {strides = array<i32>} : memref<8x128xf32, #tpu.memory_space<vmem>>, vector<8x128xf32>,
    return
  }
  func.func @transform_0(%arg0: i32) -> (i32, i32) {
    %c0_i32 = arith.constant 0 : i32
    %c0_i32_0 = arith.constant 0 : i32
    return %arg0, %c0_i32 : i32, i32
  }
  func.func @transform_1(%arg0: i32) -> (i32, i32) {
    %c0_i32 = arith.constant 0 : i32
    %c0_i32_0 = arith.constant 0 : i32
    %c0_i32_1 = arith.constant 0 : i32
    return %c0_i32, %c0_i32_0 : i32, i32
  }
  func.func @transform_2(%arg0: i32) -> (i32, i32) {
    %c0_i32 = arith.constant 0 : i32
    %c0_i32_0 = arith.constant 0 : i32
    %c0_i32_1 = arith.constant 0 : i32
    return %c0_i32, %c0_i32_0 : i32, i32
  }
  func.func @transform_3(%arg0: i32) -> (i32, i32) {
    %c0_i32 = arith.constant 0 : i32
    %c0_i32_0 = arith.constant 0 : i32
    %c0_i32_1 = arith.constant 0 : i32
    return %c0_i32, %c0_i32_0 : i32, i32
  }
  func.func @transform_4(%arg0: i32) -> (i32, i32) {
    %c0_i32 = arith.constant 0 : i32
    %c0_i32_0 = arith.constant 0 : i32
    %c0_i32_1 = arith.constant 0 : i32
    return %c0_i32, %c0_i32_0 : i32, i32
  }
  func.func @transform_5(%arg0: i32) -> (i32, i32) {
    %c0_i32 = arith.constant 0 : i32
    %c0_i32_0 = arith.constant 0 : i32
    return %arg0, %c0_i32 : i32, i32
  }
}

</mosaic_0001>

<bundles_post_ra>
// kernel: tpu_custom_call.1
= control target key start
LH: loop header
LB: loop body
LE: loop exit
PB: predicated region body
PF: predicated region fallthrough
CT: control target
= control target key end

     0   :  { %10 = vsyncpa [#allocation3], 0  ;;  %s1518_s0 = inlined_call_operand.hbm [shape: f32[16,48], index: 0, kind: input, shape index: {}]   ;;  %s1519_s1 = inlined_call_operand.hbm [shape: bf16[48,128], index: 1, kind: input, shape index: {}]   ;;  %s1520_s2 = inlined_call_operand.hbm [shape: bf16[128,128], index: 2, kind: input, shape index: {}]   ;;  %s1521_s3 = inlined_call_operand.hbm [shape: bf16[128,128], index: 3, kind: input, shape index: {}]   ;;  %s1522_s4 = inlined_call_operand.vmem [shape: f32[8,128], index: 4, kind: input, shape index: {}]   ;;  %s1523_s5 = inlined_call_operand.hbm [shape: f32[16,128], index: 5, kind: output, shape index: {}]  }
   0x1   :  { %12 = vsyncpa [#allocation3 + $0x1], 0 }
   0x2   :  { %13 = vsyncpa [#allocation6], 0 }
   0x3   :  { %14 = vsyncpa [#allocation9], 0 }
   0x4   :  { %15 = vsyncpa [#allocation4], 0 }
   0x5   :  { %17 = vsyncpa [#allocation4 + $0x1], 0  ;;  %s1202_s18 = smov 0   ;;  %s1204_s19 = smov 0  }
   0x6   :  { %s1206_s20 = smov 0   ;;  %s1208_s21 = smov 0  }
   0x7 LB: > { %s1223_s22 = sadd.s32 4294967295, %s1160_s21   ;;  %s746_s23 = sadd.s32 4294967294, %s1160_s21   ;;  %s1160_s21 = sphi %s1208_s21, %s1546_s21   ;;  %s1156_s20 = sphi %s1206_s20, %s1545_s20   ;;  %s1152_s19 = sphi %s1204_s19, %s1544_s19   ;;  %s1148_s18 = sphi %s1202_s18, %s1543_s18  }
   0x8   : > { %p43_p0 = scmp.ne.s32.totalorder %s1152_s19, %s1148_s18  ;;  %p1524_p1 = scmp.eq.s32.totalorder %s1223_s22, 0 }
   0x9   : > { %p157_p3 = scmp.eq.s32.totalorder %s746_s23, 1  ;;  %p747_p5 = scmp.ge.s32.totalorder %s1160_s21, 1 }
   0xa   : > { %p1232_p4 = por %p1524_p1, %p43_p0  ;;  %p164_p7 = scmp.lt.s32.totalorder %s1160_s21, 3 }
   0xb   : > { %p1237_p6 = por %p157_p3, %p43_p0  ;;  %s1162_s27 = smov [#allocation5]  }
   0xc   : > { %s1527_s24 = scalar_select %p1232_p4, 1, 0 }
   0xd   : > { %s1528_s25 = scalar_select %p1237_p6, 1, 0 }
   0xe   : > { %p1242_p8 = pnand %p747_p5, %p164_p7  ;;  %s176_s28 = sshll.u32 %s1162_s27, 4  ;;  %s1246_s28 = int_to_ptr.vmem [resolvable:$true] %s176_s28 }
   0xf   : > { %s1163_s30 = smov [#allocation7]   ;;  %s1164_s7 = smov [#allocation8]  }
  0x10   : > { %s1529_s26 = scalar_select %p1242_p8, 1, 0 }
  0x11   : > { %p880_p9 = pneg %p1242_p8  ;;  %s189_s6 = sshll.u32 %s1163_s30, 4  ;;  %s1257_s6 = int_to_ptr.vmem [resolvable:$true] %s189_s6 }
  0x12   : > { %s1259_s8 = sshll.u32 %s1164_s7, 4  ;;  %s972_s11 = scalar_lea.hbm %s1519_s1, 384  ;;  %s203_s8 = int_to_ptr.vmem [resolvable:$true] %s1259_s8 }
  0x13   : > { %p1253_p11 = pnand %p880_p9, %p1524_p1  ;;  %p973_p12 = scmp.ne.s32.totalorder %s1519_s1, %s972_s11 }
  0x14   : > { %p979_p5 = scmp.lt.u32.totalorder %s972_s11, %s1519_s1 }
  0x15   : > { %p1269_p13 = pneg %p1253_p11 }
  0x17   : > { %p975_p0 = pnand %p1269_p13, %p973_p12 }
  0x19   : > { %p976_p3 = pneg %p975_p0 }
  0x1b   : > { %p981_p7 = pnand %p979_p5, %p976_p3 }
  0x1d   : > { %984 = shalt.err (!%p981_p7)
}
  0x1e   : > { %s985_s17 = scalar_lea.vmem %s1246_s28, 384  ;;  %p993_p2 = scmp.lt.s32.totalorder %s1246_s28, %s1246_s28 }
  0x1f   : > { %p986_p9 = scmp.ne.s32.totalorder %s1246_s28, %s985_s17  ;;  %p994_p6 = scmp.lt.s32.totalorder %s985_s17, %s985_s17 }
  0x21   : > { %p988_p10 = pnand %p986_p9, %p1269_p13  ;;  %p995_p12 = por %p994_p6, %p993_p2 }
  0x23   : > { %p989_p1 = pneg %p988_p10 }
  0x25   : > { %p996_p0 = pnand %p995_p12, %p989_p1 }
  0x27   : > { %999 = shalt.err (!%p996_p0)
}
  0x28   : > { %s1165_s23 = smov 64   ;;  %s1166_s27 = smov 4  }
  0x29   : > { %883 = dma.hbm_to_vmem [thread:$0]  (!%p1253_p11), %s1519_s1, 384, %s1246_s28, [#allocation6], %s1165_s23, %s1165_s23, %s1166_s27  }
  0x2a   : > { %s1000_s11 = scalar_lea.hbm %s1520_s2, 1024 }
  0x2b   : > { %p1001_p1 = scmp.ne.s32.totalorder %s1520_s2, %s1000_s11  ;;  %p1007_p10 = scmp.lt.u32.totalorder %s1000_s11, %s1520_s2 }
  0x2d   : > { %p1003_p2 = pnand %p1001_p1, %p1269_p13 }
  0x2f   : > { %p1004_p6 = pneg %p1003_p2 }
  0x31   : > { %p1009_p3 = pnand %p1007_p10, %p1004_p6 }
  0x33   : > { %1012 = shalt.err (!%p1009_p3)
}
  0x34   : > { %s1013_s28 = scalar_lea.vmem %s1257_s6, 1024  ;;  %p1021_p12 = scmp.lt.s32.totalorder %s1257_s6, %s1257_s6 }
  0x35   : > { %p1014_p5 = scmp.ne.s32.totalorder %s1257_s6, %s1013_s28  ;;  %p1022_p0 = scmp.lt.s32.totalorder %s1013_s28, %s1013_s28 }
  0x37   : > { %p1016_p7 = pnand %p1014_p5, %p1269_p13  ;;  %p1023_p1 = por %p1022_p0, %p1021_p12 }
  0x39   : > { %p1017_p9 = pneg %p1016_p7 }
  0x3b   : > { %p1024_p2 = pnand %p1023_p1, %p1017_p9 }
  0x3d   : > { %1027 = shalt.err (!%p1024_p2)
}
  0x3e   : > { %886 = dma.hbm_to_vmem [thread:$0]  (!%p1253_p11), %s1520_s2, 1024, %s1257_s6, [#allocation6], %s1165_s23, %s1165_s23, %s1166_s27  }
  0x3f   : > { %s1028_s10 = scalar_lea.hbm %s1521_s3, 1024 }
  0x40   : > { %p1029_p6 = scmp.ne.s32.totalorder %s1521_s3, %s1028_s10  ;;  %p1035_p5 = scmp.lt.u32.totalorder %s1028_s10, %s1521_s3 }
  0x42   : > { %p1031_p10 = pnand %p1029_p6, %p1269_p13 }
  0x44   : > { %p1032_p3 = pneg %p1031_p10 }
  0x46   : > { %p1037_p7 = pnand %p1035_p5, %p1032_p3 }
  0x48   : > { %1040 = shalt.err (!%p1037_p7)
}
  0x49   : > { %s1041_s16 = scalar_lea.vmem %s203_s8, 1024  ;;  %p1049_p1 = scmp.lt.s32.totalorder %s203_s8, %s203_s8 }
  0x4a   : > { %p1042_p9 = scmp.ne.s32.totalorder %s203_s8, %s1041_s16  ;;  %p1050_p2 = scmp.lt.s32.totalorder %s1041_s16, %s1041_s16 }
  0x4c   : > { %p1044_p12 = pnand %p1042_p9, %p1269_p13  ;;  %p1051_p4 = por %p1050_p2, %p1049_p1 }
  0x4e   : > { %p1045_p0 = pneg %p1044_p12 }
  0x50   : > { %p1052_p8 = pnand %p1051_p4, %p1045_p0 }
  0x52   : > { %1055 = shalt.err (!%p1052_p8)
}
  0x53   : > { %889 = dma.hbm_to_vmem [thread:$0]  (!%p1253_p11), %s1521_s3, 1024, %s203_s8, [#allocation9], %s1165_s23, %s1165_s23, %s1166_s27  }
  0x54   : > { %s1342_s14 = sadd.s32 1, %s1160_s21   ;;  %s30_s17 = sadd.s32 1, %s1156_s20 }
  0x55   : > { %s27_s29 = ssub.s32 %s1160_s21, %s1342_s14  ;;  %p37_p8 = scmp.ne.s32.totalorder %s1156_s20, %s1152_s19 }
  0x56   : > { %p28_p4 = scmp.eq.s32.totalorder %s27_s29, 0  ;;  %p38_p13 = scmp.eq.s32.totalorder %s1160_s21, 0 }
  0x57   : > { %p901_p6 = scmp.lt.s32.totalorder %s1160_s21, 2  ;;  %p1532_p3 = scmp.eq.s32.totalorder %s1223_s22, 1 }
  0x58   : > { %s1352_s30 = scalar_select %p28_p4, %s1156_s20, %s30_s17  }
  0x59   : > { %p39_p10 = por %p38_p13, %p37_p8  ;;  %p1356_p5 = por %p1532_p3, %p37_p8 }
  0x5a   : > { %s219_s9 = sand.u32 1, %s1156_s20   ;;  %s753_s10 = sshll.u32 %s1160_s21, 7 }
  0x5b   : > { %s752_s8 = sshll.u32 %s219_s9, 3  ;;  %s1365_s11 = scalar_lea.hbm %s1518_s0, %s753_s10 }
  0x5c   : > { %s223_s12 = scalar_lea.vmem [#allocation2], %s752_s8  ;;  %p1367_p11 = pnand %p901_p6, %p39_p10 }
  0x5d   : > { %s230_s13 = sshll.u32 %s223_s12, 4  ;;  %s220_s16 = scalar_lea.sflag [#allocation3], %s219_s9  ;;  %s1371_s13 = int_to_ptr.vmem [resolvable:$true] %s230_s13 }
  0x5e   : > { %s1056_s6 = scalar_lea.hbm %s1365_s11, 128  ;;  %p1058_p9 = pneg %p1367_p11 }
  0x5f   : > { %p1057_p7 = scmp.ne.s32.totalorder %s1365_s11, %s1056_s6  ;;  %s1061_s17 = scalar_lea.hbm %s1518_s0, 256 }
  0x60   : > { %p1062_p1 = scmp.lt.u32.totalorder %s1365_s11, %s1518_s0  ;;  %p1063_p2 = scmp.lt.u32.totalorder %s1061_s17, %s1056_s6 }
  0x61   : > { %p1059_p12 = pnand %p1058_p9, %p1057_p7  ;;  %p1065_p8 = scmp.lt.u32.totalorder %s1056_s6, %s1365_s11 }
  0x62   : > { %p1064_p4 = por %p1063_p2, %p1062_p1 }
  0x63   : > { %p1060_p0 = pneg %p1059_p12 }
  0x64   : > { %p1066_p13 = por %p1065_p8, %p1064_p4 }
  0x66   : > { %p1067_p6 = pnand %p1066_p13, %p1060_p0 }
  0x68   : > { %1070 = shalt.err (!%p1067_p6)
}
  0x69   : > { %s1071_s9 = scalar_lea.vmem %s1371_s13, 128  ;;  %s1167_s23 = smov [#allocation2]  }
  0x6a   : > { %p1072_p10 = scmp.ne.s32.totalorder %s1371_s13, %s1071_s9  ;;  %s1076_s27 = sshll.u32 %s1167_s23, 4  ;;  %s1077_s27 = int_to_ptr.vmem [resolvable:$false] %s1076_s27 }
  0x6b   : > { %s1078_s12 = scalar_lea.vmem %s1077_s27, 256  ;;  %p1079_p12 = scmp.lt.s32.totalorder %s1371_s13, %s1077_s27 }
  0x6c   : > { %p1074_p3 = pnand %p1072_p10, %p1058_p9  ;;  %p1080_p1 = scmp.lt.s32.totalorder %s1078_s12, %s1071_s9 }
  0x6e   : > { %p1075_p7 = pneg %p1074_p3  ;;  %p1081_p2 = por %p1080_p1, %p1079_p12 }
  0x70   : > { %p1082_p4 = pnand %p1081_p2, %p1075_p7 }
  0x72   : > { %1085 = shalt.err (!%p1082_p4)
}
  0x73   : > { %893 = dma.hbm_to_vmem [thread:$0]  (!%p1367_p11), %s1365_s11, 128, %s1371_s13, %s220_s16  }
  0x74   : > { %p1535_p0 = scmp.ne.s32.totalorder %s1529_s26, 0 }
  0x75   : > { %s1401_s6 = sand.u32 (!%p1535_p0), 1, %s1152_s19   ;;  %p1536_p9 = scmp.ne.s32.totalorder (!%p1535_p0), %s1527_s24, 0 }
  0x76   : > { %239 = sbr.rel (%p1535_p0) target bundleno = 1140 (0x474), region = 40  ;;  %s755_s28 = sshll.u32 (!%p1535_p0), %s1401_s6, 3 }
  0x77   : > { %s242_s29 = scalar_lea.sflag (!%p1535_p0), [#allocation3], %s1401_s6  ;;  %s245_s17 = scalar_lea.vmem (!%p1535_p0), [#allocation2], %s755_s28 }
  0x7d   : > { %1131 = dma.done.wait (%p1536_p9), %s242_s29, 128  }
  0x7e   : > { %1133 = vsyncadd (%p1536_p9), %s242_s29, 4294967168  ;;  %p1537_p11 = scmp.eq.s32.totalorder %s1223_s22, 0 }
  0x80   : > { %1135 = dma.done.wait (%p1537_p11), [#allocation6], 1408   ;;  %p1538_p8 = pmov %p1537_p11 }
  0x82   : > { %1137 = vsyncadd (%p1538_p8), [#allocation6], 4294965888  ;;  %p1539_p13 = pmov %p1538_p8 }
  0x83   : > { %p1540_p6 = pmov %p1538_p8 }
  0x84   : > { %1139 = dma.done.wait (%p1539_p13), [#allocation9], 1024  }
  0x85   : > { %1141 = vsyncadd (%p1540_p6), [#allocation9], 4294966272  ;;  %v1168_v0 = vmov 0.0   ;;  %vm1169_vm0 = vmmov 0   ;;  %v947_v1 = vld [vmem:[#allocation5] sm:$0xff]   ;;  %v948_v2 = vld [vmem:[#allocation5 + $0x8] sm:$0xff]  }
  0x86   : > { %814 = vmatprep.subr.bf16.mxu0 %v1168_v0  ;;  %820 = vmatprep.mubr.msk.bf16.mxu0 %vm1169_vm0, %v1168_v0  ;;  %v950_v3 = vld [vmem:[#allocation7] sm:$0xff]   ;;  %v949_v4 = vld [vmem:[#allocation5 + $0x10] sm:$0xff]   ;;  %vm323_vm1 = vcmask 392192   ;;  %v951_v6 = vld [vmem:[#allocation7 + $0x8] sm:$0xff]   ;;  %v1170_v62 = vmov 0   ;;  %s789_s11 = sshll.u32 %s1223_s22, 7 }
  0x87   : > { %824 = vmatprep.subr.bf16.mxu1 %v1168_v0  ;;  %840 = vmatprep.mubr.msk.bf16.mxu1 %vm1169_vm0, %v1168_v0  ;;  %v285_v5 = vld [vmem:[%s245_s17] sm:$0xff]  ;;  %v952_v8 = vld [vmem:[#allocation7 + $0x10] sm:$0xff]   ;;  %v955_v11 = vld [vmem:[#allocation7 + $0x28] sm:$0xff]   ;;  %s283_s13 = scalar_lea.vmem [#allocation10], %s755_s28  ;;  %s1474_s8 = scalar_lea.hbm %s1523_s5, %s789_s11 }
  0x88   : > { %815 = vmatpush3.bf16.msra.mxu0 %v947_v1  ;;  %825 = vmatpush3.bf16.msra.mxu1 %v950_v3  ;;  %v286_v7 = vpack.c.bf16 %v285_v5, %v285_v5  ;;  %v953_v9 = vld [vmem:[#allocation7 + $0x18] sm:$0xff]   ;;  %v954_v10 = vld [vmem:[#allocation7 + $0x20] sm:$0xff]   ;;  %v956_v12 = vld [vmem:[#allocation7 + $0x30] sm:$0xff]   ;;  %s647_s15 = sshll.u32 %s283_s13, 4  ;;  %s634_s9 = scalar_lea.sflag [#allocation4], %s1401_s6  ;;  %s1476_s15 = int_to_ptr.vmem [resolvable:$true] %s647_s15 }
  0x89   : > { %816 = vmatprep.subr.bf16.mxu0 %v1168_v0  ;;  %826 = vmatprep.subr.bf16.mxu1 %v1168_v0  ;;  %v957_v13 = vld [vmem:[#allocation7 + $0x38] sm:$0xff]   ;;  %v958_v14 = vld [vmem:[#allocation8] sm:$0xff]   ;;  %v959_v31 = vld [vmem:[#allocation8 + $0x8] sm:$0xff]   ;;  %s1086_s23 = scalar_lea.vmem %s1476_s15, 128  ;;  %s1171_s22 = smov [#allocation10]  }
  0x8a   : > { %v760_v15 = vld [vmem:[%s1522_s4] ss:$0 sm:$0xff]  ;;  %v765_v25 = vld [vmem:[%s1522_s4 + $0x1] ss:$0 sm:$0xff]  ;;  %v766_v27 = vld [vmem:[%s1522_s4 + $0x2] ss:$0 sm:$0xff]  ;;  %946 = vset.pattern.permute.xlu0 %v1170_v62  ;;  %p1087_p10 = scmp.ne.s32.totalorder %s1476_s15, %s1086_s23 }
  0x8b   : > { %v960_v32 = vld [vmem:[#allocation8 + $0x10] sm:$0xff]   ;;  %v961_v33 = vld [vmem:[#allocation8 + $0x18] sm:$0xff]   ;;  %v962_v34 = vld [vmem:[#allocation8 + $0x20] sm:$0xff]   ;;  %s1090_s28 = sshll.u32 %s1171_s22, 4  ;;  %s1091_s28 = int_to_ptr.vmem [resolvable:$false] %s1090_s28 }
  0x8c   : > { %817 = vmatpush3.bf16.msra.mxu0 %v948_v2  ;;  %827 = vmatpush3.bf16.msra.mxu1 %v951_v6  ;;  %v963_v35 = vld [vmem:[#allocation8 + $0x28] sm:$0xff]   ;;  %v964_v36 = vld [vmem:[#allocation8 + $0x30] sm:$0xff]   ;;  %v965_v37 = vld [vmem:[#allocation8 + $0x38] sm:$0xff]   ;;  %p1088_p3 = pnand %p1087_p10, %p1356_p5  ;;  %s1092_s27 = scalar_lea.vmem %s1091_s28, 256 }
  0x8d   : > { %818 = vmatprep.subr.bf16.mxu0 %v1168_v0  ;;  %828 = vmatprep.subr.bf16.mxu1 %v1168_v0  ;;  %v767_v38 = vld [vmem:[%s1522_s4 + $0x3] ss:$0 sm:$0xff]  ;;  %v776_v48 = vld [vmem:[%s1522_s4 + $0x4] ss:$0 sm:$0xff]  ;;  %v777_v50 = vld [vmem:[%s1522_s4 + $0x5] ss:$0 sm:$0xff]  ;;  %p1093_p12 = scmp.lt.s32.totalorder %s1476_s15, %s1091_s28  ;;  %p1094_p1 = scmp.lt.s32.totalorder %s1092_s27, %s1086_s23 }
  0x8e   : > { %v778_v55 = vld [vmem:[%s1522_s4 + $0x6] ss:$0 sm:$0xff]  ;;  %v787_v1 = vld [vmem:[%s1522_s4 + $0x7] ss:$0 sm:$0xff]  ;;  %p1089_p7 = pneg %p1088_p3 }
  0x8f   : > { %p1095_p2 = por %p1094_p1, %p1093_p12 }
  0x90   : > { %819 = vmatpush3.bf16.msra.mxu0 %v949_v4  ;;  %829 = vmatpush3.bf16.msra.mxu1 %v952_v8 }
  0x91   : > { %844 = vmatprep.subr.bf16.mxu0 %v1168_v0  ;;  %830 = vmatprep.subr.bf16.mxu1 %v1168_v0  ;;  %p1096_p4 = pnand %p1095_p2, %p1089_p7 }
  0x93   : > { %821 = vmatmul.mubr.msk.bf16.vlgmr.msra.gmra.mrb[0].mxu0 %vm323_vm1, %v286_v7 }
  0x94   : > { %860 = vmatprep.mubr.msk.bf16.mxu0 %vm1169_vm0, %v1168_v0  ;;  %831 = vmatpush3.bf16.msra.mxu1 %v953_v9 }
  0x95   : > { %832 = vmatprep.subr.bf16.mxu1 %v1168_v0  ;;  %845 = vmatpush3.bf16.msra.mxu0 %v958_v14 }
  0x96   : > { %846 = vmatprep.subr.bf16.mxu0 %v1168_v0 }
  0x98   : > { %833 = vmatpush3.bf16.msra.mxu1 %v954_v10 }
  0x99   : > { %834 = vmatprep.subr.bf16.mxu1 %v1168_v0  ;;  %847 = vmatpush3.bf16.msra.mxu0 %v959_v31 }
  0x9a   : > { %848 = vmatprep.subr.bf16.mxu0 %v1168_v0 }
  0x9c   : > { %835 = vmatpush3.bf16.msra.mxu1 %v955_v11 }
  0x9d   : > { %836 = vmatprep.subr.bf16.mxu1 %v1168_v0  ;;  %849 = vmatpush3.bf16.msra.mxu0 %v960_v32 }
  0x9e   : > { %850 = vmatprep.subr.bf16.mxu0 %v1168_v0 }
  0xa0   : > { %837 = vmatpush3.bf16.msra.mxu1 %v956_v12 }
  0xa1   : > { %838 = vmatprep.subr.bf16.mxu1 %v1168_v0  ;;  %851 = vmatpush3.bf16.msra.mxu0 %v961_v33 }
  0xa2   : > { %852 = vmatprep.subr.bf16.mxu0 %v1168_v0 }
  0xa4   : > { %839 = vmatpush3.bf16.msra.mxu1 %v957_v13 }
  0xa5   : > { %853 = vmatpush3.bf16.msra.mxu0 %v962_v34 }
  0xa6   : > { %854 = vmatprep.subr.bf16.mxu0 %v1168_v0 }
  0xa9   : > { %855 = vmatpush3.bf16.msra.mxu0 %v963_v35 }
  0xaa   : > { %856 = vmatprep.subr.bf16.mxu0 %v1168_v0 }
  0xad   : > { %857 = vmatpush3.bf16.msra.mxu0 %v964_v36 }
  0xae   : > { %858 = vmatprep.subr.bf16.mxu0 %v1168_v0 }
  0xb1   : > { %859 = vmatpush3.bf16.msra.mxu0 %v965_v37 }
 0x166   : > { %v361_v16 = vpop.f32.mrb[0].mxu0 }
 0x167   : > { %v362_v17 = vadd.f32 %v760_v15, %v361_v16  ;;  %v822_v18 = vpop.f32.mrb[1].mxu0 }
 0x168   : > { %v364_v19 = vpop.f32.mrb[2].mxu0 }
 0x169   : > { %v368_v20 = vmul.f32 0.70710677, %v362_v17  ;;  %v823_v21 = vpop.f32.mrb[3].mxu0  ;;  %v367_v23 = vmul.f32 0.5, %v362_v17 }
 0x16b   : > { %966 = verf.f32 %v368_v20 }
 0x175   : > { %v967_v22 = vpop.eup %966 }
 0x176   : > { %v370_v24 = vadd.f32 1.0, %v967_v22 }
 0x178   : > { %v371_v26 = vmul.f32 %v370_v24, %v367_v23 }
 0x17a   : > { %v376_v28 = vmul.f32 %v765_v25, %v371_v26 }
 0x17c   : > { %v381_v29 = vadd.f32 %v766_v27, %v376_v28 }
 0x17e   : > { %v382_v30 = vpack.c.bf16 %v381_v29, %v381_v29 }
 0x180   : > { %841 = vmatmul.mubr.bf16.vlgmr.msra.gmra.mrb[0].mxu1 %v382_v30 }
 0x253   : > { %v485_v39 = vpop.f32.mrb[0].mxu1 }
 0x254   : > { %v486_v40 = vadd.f32 %v767_v38, %v485_v39  ;;  %v842_v41 = vpop.f32.mrb[1].mxu1 }
 0x255   : > { %v488_v42 = vpop.f32.mrb[2].mxu1 }
 0x256   : > { %v492_v43 = vmul.f32 0.70710677, %v486_v40  ;;  %v843_v44 = vpop.f32.mrb[3].mxu1  ;;  %v491_v46 = vmul.f32 0.5, %v486_v40 }
 0x258   : > { %968 = verf.f32 %v492_v43 }
 0x262   : > { %v969_v45 = vpop.eup %968 }
 0x263   : > { %v494_v47 = vadd.f32 1.0, %v969_v45 }
 0x265   : > { %v495_v49 = vmul.f32 %v494_v47, %v491_v46 }
 0x267   : > { %v500_v51 = vmul.f32 %v776_v48, %v495_v49 }
 0x269   : > { %v505_v52 = vadd.f32 %v777_v50, %v500_v51 }
 0x26b   : > { %v506_v53 = vadd.f32 %v505_v52, %v381_v29 }
 0x26d   : > { %v507_v54 = vpack.c.bf16 %v506_v53, %v506_v53 }
 0x26f   : > { %861 = vmatmul.mubr.bf16.vlgmr.msra.gmra.mrb[4].mxu0 %v507_v54 }
 0x342   : > { %v610_v56 = vpop.f32.mrb[4].mxu0 }
 0x343   : > { %v611_v57 = vadd.f32 %v778_v55, %v610_v56  ;;  %v862_v58 = vpop.f32.mrb[5].mxu0 }
 0x344   : > { %v613_v59 = vpop.f32.mrb[6].mxu0 }
 0x345   : > { %v863_v60 = vpop.f32.mrb[7].mxu0  ;;  %v616_v61 = vmul.f32 %v611_v57, %v611_v57 }
 0x347   : > { %617 = vadd.xlane.f32.xlu0 %v616_v61 }
 0x3d4   : > { %v618_v63 = vpop.xlane.xlu0 %617 }
 0x3d5   : > { %v619_v0 = vmax.f32 %v618_v63, 1e-24 }
 0x3d7   : > { %970 = vrsqrt.f32 %v619_v0 }
 0x3e1   : > { %v971_v2 = vpop.eup %970 }
 0x3e2   : > { %v625_v3 = vmul.f32 %v971_v2, %v787_v1 }
 0x3e4   : > { %628 = vperm.xlu0 %946, %v625_v3  }
 0x463   : > { %v629_v4 = vpop.permute.xlu0 %628 }
 0x464   : > { %v631_v5 = vmul.f32 %v629_v4, %v611_v57 }
 0x466   : > { %632 = vst [vmem:[%s283_s13] sm:$0xff] %v631_v5 }
 0x467   : > { %1099 = shalt.err (!%p1096_p4)
}
 0x468   : > { %s1100_s6 = scalar_lea.hbm %s1474_s8, 128  ;;  %s1104_s17 = scalar_lea.hbm %s1523_s5, 256 }
 0x469   : > { %p1101_p0 = scmp.ne.s32.totalorder %s1474_s8, %s1100_s6  ;;  %p1105_p8 = scmp.lt.u32.totalorder %s1474_s8, %s1523_s5 }
 0x46a   : > { %p1106_p13 = scmp.lt.u32.totalorder %s1104_s17, %s1100_s6  ;;  %p1108_p10 = scmp.lt.u32.totalorder %s1100_s6, %s1474_s8 }
 0x46b   : > { %p1102_p9 = pnand %p1101_p0, %p1356_p5 }
 0x46c   : > { %p1107_p6 = por %p1106_p13, %p1105_p8 }
 0x46d   : > { %p1103_p11 = pneg %p1102_p9 }
 0x46e   : > { %p1109_p3 = por %p1108_p10, %p1107_p6 }
 0x470   : > { %p1110_p7 = pnand %p1109_p3, %p1103_p11 }
 0x472   : > { %1113 = shalt.err (!%p1110_p7)
}
 0x473   : > { %878 = dma.vmem_to_hbm [thread:$0]  (%p1356_p5), %s1476_s15, 128, %s1474_s8, %s634_s9  }
 0x474 PF: > { %s659_s11 = sand.u32 1, %s1148_s18   ;;  %p1541_p12 = scmp.ne.s32.totalorder %s1528_s25, 0 }
 0x475   : > { %p1542_p1 = scmp.ge.s32.totalorder %s1160_s21, 2  ;;  %s660_s13 = scalar_lea.sflag [#allocation4], %s659_s11 }
 0x477   : > { %p895_p2 = pnand %p1542_p1, %p1541_p12 }
 0x479   : > { %1143 = dma.done.wait (!%p895_p2), %s660_s13, 128  }
 0x47a   : > { %1145 = vsyncadd (!%p895_p2), %s660_s13, 4294967168  ;;  %p20_p4 = scmp.ge.s32.totalorder %s1342_s14, 4   ;;  %s1543_s18 = smov %s1152_s19 }
 0x47b   : > { %s1544_s19 = smov %s1156_s20  ;;  %s1545_s20 = smov %s1352_s30 }
 0x47c   : > { %s1546_s21 = smov %s1342_s14  ;;  %22 = sbr.rel (!%p20_p4) target bundleno = 7 (0x7), region = 97 }
 0x483   :  { %665 = vsyncpa [#allocation3], 1 }
 0x484   :  { %667 = vsyncpa [#allocation3 + $0x1], 1 }
 0x485   :  { %668 = vsyncpa [#allocation6], 1 }
 0x486   :  { %669 = vsyncpa [#allocation9], 1 }
 0x487   :  { %670 = vsyncpa [#allocation4], 1 }
 0x488   :  { %672 = vsyncpa [#allocation4 + $0x1], 1 }

</bundles_post_ra>
